<compile_context>
chip_gen: v5e
topology: v5e:2x2
jax: 0.10.0
libtpu: 0.0.40
codegen_flags: <defaults>
</compile_context>

<pallas_src>
import jax
import jax.numpy as jnp
from jax.experimental import pallas as pl
from jax.experimental.pallas import tpu as pltpu


def _pose_mlp_kernel(img_ref, pose_ref, w1i_ref, w1p_ref, b1_ref,
                     w2_ref, b2_ref, w3_ref, b3_ref, o_ref):
    cdt = w1i_ref.dtype                      # MXU-input dtype (f32 or bf16)
    img = img_ref[...].astype(cdt)
    pse = pose_ref[...].astype(cdt)

    # fc1, split across the image / pose halves of W1; accumulate in f32.
    h1 = jnp.dot(img, w1i_ref[...], preferred_element_type=jnp.float32)
    h1 = h1 + jnp.dot(pse, w1p_ref[...], preferred_element_type=jnp.float32)
    h1 = jnp.maximum(h1 + b1_ref[...], 0.0)          # bias + ReLU stay f32 (VPU)

    # fc2
    h2 = jnp.dot(h1.astype(cdt), w2_ref[...], preferred_element_type=jnp.float32)
    h2 = jnp.maximum(h2 + b2_ref[...], 0.0)

    # fc3 (no activation)
    y = jnp.dot(h2.astype(cdt), w3_ref[...], preferred_element_type=jnp.float32)
    y = y + b3_ref[...]
    o_ref[...] = y.astype(o_ref.dtype)


def _round_up(x, m):
    return ((x + m - 1) // m) * m


def pose_inference_forward(image, pose, params, *, tile_b=None, compute_dtype=None):
    """image: (B, H*W) f32, pose: (B, 16) f32 -> (B, n_output_pose_params) f32."""
    assert image.ndim == 2 and pose.ndim == 2
    assert image.shape[0] == pose.shape[0]
    B, HW = image.shape
    P = pose.shape[1]

    w1, b1 = params["w1"], params["b1"]
    w2, b2 = params["w2"], params["b2"]
    w3, b3 = params["w3"], params["b3"]
    D, H = w1.shape
    O = w3.shape[1]
    assert D == HW + P

    # Split W1 once (wrapper-side, hoisted) so the kernel never needs the concat.
    w1_img, w1_pose = w1[:HW], w1[HW:]
    if compute_dtype is not None:
        w1_img = w1_img.astype(compute_dtype)
        w1_pose = w1_pose.astype(compute_dtype)
        w2 = w2.astype(compute_dtype)
        w3 = w3.astype(compute_dtype)
    w_item = jnp.dtype(compute_dtype).itemsize if compute_dtype is not None else 4

    # Batch tile: multiple of 8 sublanes; large tiles amortize the ~0.35us/step cost.
    if tile_b is None:
        tile_b = min(1024, _round_up(B, 8))
    tile_b = max(8, _round_up(tile_b, 8))
    Bp = _round_up(B, tile_b)
    if Bp != B:
        image = jnp.pad(image, ((0, Bp - B), (0, 0)))
        pose = jnp.pad(pose, ((0, Bp - B), (0, 0)))
    num_tiles = Bp // tile_b

    # Scoped-VMEM budget from actual (sublane/lane padded) tile footprints.
    def _tile_bytes(rows, cols, itemsize):
        return _round_up(rows, 8) * _round_up(cols, 128) * itemsize

    vmem_est = (
        2 * _tile_bytes(tile_b, HW, 4)        # image tile (double buffered)
        + 2 * _tile_bytes(tile_b, P, 4)       # pose tile
        + 2 * _tile_bytes(tile_b, O, 4)       # output tile
        + _tile_bytes(HW, H, w_item) + _tile_bytes(P, H, w_item)
        + _tile_bytes(H, H, w_item) + _tile_bytes(H, O, w_item)
        + 3 * _tile_bytes(1, H, 4)
    )
    vmem_limit = int(min(48 * 1024 * 1024, max(32 * 1024 * 1024, 4 * vmem_est)))

    flops = 2 * Bp * (HW * H + P * H + H * H + H * O)
    bytes_accessed = (
        Bp * (HW + P) * 4 + Bp * O * 4
        + (HW * H + P * H + H * H + H * O) * w_item
        + (2 * H + O) * 4
    )
    cost = pl.CostEstimate(flops=flops, transcendentals=0,
                           bytes_accessed=bytes_accessed)

    def const(shape):
        return pl.BlockSpec(shape, lambda i: tuple(0 for _ in shape))

    out = pl.pallas_call(
        _pose_mlp_kernel,
        out_shape=jax.ShapeDtypeStruct((Bp, O), jnp.float32),
        grid=(num_tiles,),
        in_specs=[
            pl.BlockSpec((tile_b, HW), lambda i: (i, 0)),   # image tile (streamed)
            pl.BlockSpec((tile_b, P), lambda i: (i, 0)),    # pose tile  (streamed)
            const((HW, H)),   # W1_img  (VMEM-resident across the grid)
            const((P, H)),    # W1_pose
            const((1, H)),    # b1
            const((H, H)),    # W2
            const((1, H)),    # b2
            const((H, O)),    # W3
            const((1, O)),    # b3
        ],
        out_specs=pl.BlockSpec((tile_b, O), lambda i: (i, 0)),
        compiler_params=pltpu.CompilerParams(
            dimension_semantics=("parallel",),
            vmem_limit_bytes=vmem_limit,
        ),
        cost_estimate=cost,
    )(image, pose, w1_img, w1_pose, b1, w2, b2, w3, b3)
    return out[:B]


def init_pose_inference_params(key, image_shape, n_output_pose_params, num_hidden):
    """Deterministic synthetic parameters (shapes match the PyTorch module)."""
    height, width = image_shape
    assert height == width
    n_pose_params_input = 16
    input_dim = height * width + n_pose_params_input
    num_points = 1
    output_dim = n_output_pose_params

    k1, k2, k3, k4, k5, k6 = jax.random.split(key, 6)

    def dense(kw, kb, fan_in, fan_out):
        # uniform(-1/sqrt(fan_in), 1/sqrt(fan_in)) like torch.nn.Linear default
        lim = 1.0 / jnp.sqrt(jnp.float32(fan_in))
        w = jax.random.uniform(kw, (fan_in, fan_out), jnp.float32, -lim, lim)
        b = jax.random.uniform(kb, (1, fan_out), jnp.float32, -lim, lim)
        return w, b

    w1, b1 = dense(k1, k2, input_dim, num_hidden)
    w2, b2 = dense(k3, k4, num_hidden, num_hidden)
    w3, b3 = dense(k5, k6, num_hidden, num_points * output_dim)
    return {"w1": w1, "b1": b1, "w2": w2, "b2": b2, "w3": w3, "b3": b3}


def _reference_forward(image, pose, params, compute_dtype=None):
    """Plain-JAX reference of the same math (optionally mimicking bf16 MXU inputs)."""
    x = jnp.concatenate([image, pose], axis=-1)
    w1, b1 = params["w1"], params["b1"]
    w2, b2 = params["w2"], params["b2"]
    w3, b3 = params["w3"], params["b3"]
    if compute_dtype is None:
        h1 = jnp.maximum(x @ w1 + b1, 0.0)
        h2 = jnp.maximum(h1 @ w2 + b2, 0.0)
        return h2 @ w3 + b3
    cdt = compute_dtype
    h1 = jnp.maximum(
        jnp.dot(x.astype(cdt), w1.astype(cdt), preferred_element_type=jnp.float32) + b1, 0.0)
    h2 = jnp.maximum(
        jnp.dot(h1.astype(cdt), w2.astype(cdt), preferred_element_type=jnp.float32) + b2, 0.0)
    return jnp.dot(h2.astype(cdt), w3.astype(cdt), preferred_element_type=jnp.float32) + b3


if __name__ == "__main__":
    # Small shapes consistent with the module: 16x16 image, 16 pose params in,
    # 32 hidden, 8 output pose params.  Batch 50 with tile_b=16 exercises both the
    # multi-step batch grid and the batch-padding path (50 -> 64 rows, 4 grid steps).
    key = jax.random.PRNGKey(0)
    k_img, k_pose, k_params = jax.random.split(key, 3)

    B = 50
    image_shape = (16, 16)
    n_output_pose_params = 8
    num_hidden = 32

    image = jax.random.normal(k_img, (B, image_shape[0] * image_shape[1]), jnp.float32)
    pose = jax.random.normal(k_pose, (B, 16), jnp.float32)
    params = init_pose_inference_params(k_params, image_shape, n_output_pose_params, num_hidden)

    # f32 path (tight check against plain-JAX reference).
    out_f32 = pose_inference_forward(image, pose, params, tile_b=16)
    out_f32 = jax.block_until_ready(out_f32)
    ref_f32 = _reference_forward(image, pose, params)
    assert out_f32.shape == (B, n_output_pose_params)
    assert jnp.allclose(out_f32, ref_f32, atol=1e-4, rtol=1e-4)

    # bf16-weights path (MXU-native on v5e/v6e/v7x); f32 accumulation and f32
    # bias/ReLU, checked against a reference mimicking the same casts.
    out_bf16 = pose_inference_forward(image, pose, params, tile_b=16,
                                      compute_dtype=jnp.bfloat16)
    out_bf16 = jax.block_until_ready(out_bf16)
    ref_bf16 = _reference_forward(image, pose, params, compute_dtype=jnp.bfloat16)
    assert out_bf16.shape == (B, n_output_pose_params)
    assert jnp.allclose(out_bf16, ref_bf16, atol=2e-2, rtol=2e-2)

    print("KERNEL_OK")
</pallas_src>

<mosaic_0001>
module attributes {stable_mosaic.version = 11 : i64} {
  func.func @_pose_mlp_kernel(%arg0: i32, %arg1: memref<16x256xf32, #tpu.memory_space<vmem>>, %arg2: memref<16x16xf32, #tpu.memory_space<vmem>>, %arg3: memref<256x32xf32, #tpu.memory_space<vmem>>, %arg4: memref<16x32xf32, #tpu.memory_space<vmem>>, %arg5: memref<1x32xf32, #tpu.memory_space<vmem>>, %arg6: memref<32x32xf32, #tpu.memory_space<vmem>>, %arg7: memref<1x32xf32, #tpu.memory_space<vmem>>, %arg8: memref<32x8xf32, #tpu.memory_space<vmem>>, %arg9: memref<1x8xf32, #tpu.memory_space<vmem>>, %arg10: memref<16x8xf32, #tpu.memory_space<vmem>>) attributes {dimension_semantics = [#tpu.dimension_semantics<parallel>], iteration_bounds = array<i64: 4>, scalar_prefetch = 0 : i64, scratch_operands = 0 : i64, tpu.core_type = #tpu.core_type<tc>, window_params = [{transform_indices = @transform_0, window_bounds = array<i64: 16, 256>}, {transform_indices = @transform_1, window_bounds = array<i64: 16, 16>}, {pipeline_mode = #tpu.pipeline_mode<synchronous>, transform_indices = @transform_2, window_bounds = array<i64: 256, 32>}, {pipeline_mode = #tpu.pipeline_mode<synchronous>, transform_indices = @transform_3, window_bounds = array<i64: 16, 32>}, {pipeline_mode = #tpu.pipeline_mode<synchronous>, transform_indices = @transform_4, window_bounds = array<i64: 1, 32>}, {pipeline_mode = #tpu.pipeline_mode<synchronous>, transform_indices = @transform_5, window_bounds = array<i64: 32, 32>}, {pipeline_mode = #tpu.pipeline_mode<synchronous>, transform_indices = @transform_6, window_bounds = array<i64: 1, 32>}, {pipeline_mode = #tpu.pipeline_mode<synchronous>, transform_indices = @transform_7, window_bounds = array<i64: 32, 8>}, {pipeline_mode = #tpu.pipeline_mode<synchronous>, transform_indices = @transform_8, window_bounds = array<i64: 1, 8>}, {transform_indices = @transform_9, window_bounds = array<i64: 16, 8>}]} {
    %c0 = arith.constant 0 : index
    %c0_0 = arith.constant 0 : index
    %0 = vector.load %arg1[%c0, %c0_0] : memref<16x256xf32, #tpu.memory_space<vmem>>, vector<16x256xf32>
    %c0_1 = arith.constant 0 : index
    %c0_2 = arith.constant 0 : index
    %1 = vector.load %arg2[%c0_1, %c0_2] : memref<16x16xf32, #tpu.memory_space<vmem>>, vector<16x16xf32>
    %c0_3 = arith.constant 0 : index
    %c0_4 = arith.constant 0 : index
    %2 = vector.load %arg3[%c0_3, %c0_4] : memref<256x32xf32, #tpu.memory_space<vmem>>, vector<256x32xf32>
    %cst = arith.constant dense<0.000000e+00> : vector<16x32xf32>
    %3 = tpu.matmul %0, %2, %cst {dimension_numbers = #tpu.dot_dimension_numbers<[1], [0], [0], [1], [0, 0, 1, 1], [], []>} : vector<16x256xf32>, vector<256x32xf32>, vector<16x32xf32> -> vector<16x32xf32>
    %c0_5 = arith.constant 0 : index
    %c0_6 = arith.constant 0 : index
    %4 = vector.load %arg4[%c0_5, %c0_6] : memref<16x32xf32, #tpu.memory_space<vmem>>, vector<16x32xf32>
    %cst_7 = arith.constant dense<0.000000e+00> : vector<16x32xf32>
    %5 = tpu.matmul %1, %4, %cst_7 {dimension_numbers = #tpu.dot_dimension_numbers<[1], [0], [0], [1], [0, 0, 1, 1], [], []>} : vector<16x16xf32>, vector<16x32xf32>, vector<16x32xf32> -> vector<16x32xf32>
    %6 = arith.addf %3, %5 : vector<16x32xf32>
    %c0_8 = arith.constant 0 : index
    %c0_9 = arith.constant 0 : index
    %7 = vector.load %arg5[%c0_8, %c0_9] : memref<1x32xf32, #tpu.memory_space<vmem>>, vector<1x32xf32>
    %8 = vector.broadcast %7 : vector<1x32xf32> to vector<16x32xf32>
    %9 = arith.addf %6, %8 : vector<16x32xf32>
    %cst_10 = arith.constant 0.000000e+00 : f32
    %10 = vector.broadcast %cst_10 : f32 to vector<16x32xf32>
    %11 = arith.maximumf %9, %10 : vector<16x32xf32>
    %c0_11 = arith.constant 0 : index
    %c0_12 = arith.constant 0 : index
    %12 = vector.load %arg6[%c0_11, %c0_12] : memref<32x32xf32, #tpu.memory_space<vmem>>, vector<32x32xf32>
    %cst_13 = arith.constant dense<0.000000e+00> : vector<16x32xf32>
    %13 = tpu.matmul %11, %12, %cst_13 {dimension_numbers = #tpu.dot_dimension_numbers<[1], [0], [0], [1], [0, 0, 1, 1], [], []>} : vector<16x32xf32>, vector<32x32xf32>, vector<16x32xf32> -> vector<16x32xf32>
    %c0_14 = arith.constant 0 : index
    %c0_15 = arith.constant 0 : index
    %14 = vector.load %arg7[%c0_14, %c0_15] : memref<1x32xf32, #tpu.memory_space<vmem>>, vector<1x32xf32>
    %15 = vector.broadcast %14 : vector<1x32xf32> to vector<16x32xf32>
    %16 = arith.addf %13, %15 : vector<16x32xf32>
    %cst_16 = arith.constant 0.000000e+00 : f32
    %17 = vector.broadcast %cst_16 : f32 to vector<16x32xf32>
    %18 = arith.maximumf %16, %17 : vector<16x32xf32>
    %c0_17 = arith.constant 0 : index
    %c0_18 = arith.constant 0 : index
    %19 = vector.load %arg8[%c0_17, %c0_18] : memref<32x8xf32, #tpu.memory_space<vmem>>, vector<32x8xf32>
    %cst_19 = arith.constant dense<0.000000e+00> : vector<16x8xf32>
    %20 = tpu.matmul %18, %19, %cst_19 {dimension_numbers = #tpu.dot_dimension_numbers<[1], [0], [0], [1], [0, 0, 1, 1], [], []>} : vector<16x32xf32>, vector<32x8xf32>, vector<16x8xf32> -> vector<16x8xf32>
    %c0_20 = arith.constant 0 : index
    %c0_21 = arith.constant 0 : index
    %21 = vector.load %arg9[%c0_20, %c0_21] : memref<1x8xf32, #tpu.memory_space<vmem>>, vector<1x8xf32>
    %22 = vector.broadcast %21 : vector<1x8xf32> to vector<16x8xf32>
    %23 = arith.addf %20, %22 : vector<16x8xf32>
    %c0_22 = arith.constant 0 : index
    %c0_23 = arith.constant 0 : index
    %24 = vector.load %arg10[%c0_22, %c0_23] : memref<16x8xf32, #tpu.memory_space<vmem>>, vector<16x8xf32>
    tpu.vector_store %arg10[%c0_22, %c0_23], %23 {strides = array<i32>} : memref<16x8xf32, #tpu.memory_space<vmem>>, vector<16x8xf32>,
    return
  }
  func.func @transform_0(%arg0: i32) -> (i32, i32) {
    %c0_i32 = arith.constant 0 : i32
    %c0_i32_0 = arith.constant 0 : i32
    return %arg0, %c0_i32 : i32, i32
  }
  func.func @transform_1(%arg0: i32) -> (i32, i32) {
    %c0_i32 = arith.constant 0 : i32
    %c0_i32_0 = arith.constant 0 : i32
    return %arg0, %c0_i32 : i32, i32
  }
  func.func @transform_2(%arg0: i32) -> (i32, i32) {
    %c0_i32 = arith.constant 0 : i32
    %c0_i32_0 = arith.constant 0 : i32
    %c0_i32_1 = arith.constant 0 : i32
    return %c0_i32, %c0_i32_0 : i32, i32
  }
  func.func @transform_3(%arg0: i32) -> (i32, i32) {
    %c0_i32 = arith.constant 0 : i32
    %c0_i32_0 = arith.constant 0 : i32
    %c0_i32_1 = arith.constant 0 : i32
    return %c0_i32, %c0_i32_0 : i32, i32
  }
  func.func @transform_4(%arg0: i32) -> (i32, i32) {
    %c0_i32 = arith.constant 0 : i32
    %c0_i32_0 = arith.constant 0 : i32
    %c0_i32_1 = arith.constant 0 : i32
    return %c0_i32, %c0_i32_0 : i32, i32
  }
  func.func @transform_5(%arg0: i32) -> (i32, i32) {
    %c0_i32 = arith.constant 0 : i32
    %c0_i32_0 = arith.constant 0 : i32
    %c0_i32_1 = arith.constant 0 : i32
    return %c0_i32, %c0_i32_0 : i32, i32
  }
  func.func @transform_6(%arg0: i32) -> (i32, i32) {
    %c0_i32 = arith.constant 0 : i32
    %c0_i32_0 = arith.constant 0 : i32
    %c0_i32_1 = arith.constant 0 : i32
    return %c0_i32, %c0_i32_0 : i32, i32
  }
  func.func @transform_7(%arg0: i32) -> (i32, i32) {
    %c0_i32 = arith.constant 0 : i32
    %c0_i32_0 = arith.constant 0 : i32
    %c0_i32_1 = arith.constant 0 : i32
    return %c0_i32, %c0_i32_0 : i32, i32
  }
  func.func @transform_8(%arg0: i32) -> (i32, i32) {
    %c0_i32 = arith.constant 0 : i32
    %c0_i32_0 = arith.constant 0 : i32
    %c0_i32_1 = arith.constant 0 : i32
    return %c0_i32, %c0_i32_0 : i32, i32
  }
  func.func @transform_9(%arg0: i32) -> (i32, i32) {
    %c0_i32 = arith.constant 0 : i32
    %c0_i32_0 = arith.constant 0 : i32
    return %arg0, %c0_i32 : i32, i32
  }
}

</mosaic_0001>

<bundles_post_ra>
// kernel: tpu_custom_call.1
= control target key start
LH: loop header
LB: loop body
LE: loop exit
PB: predicated region body
PF: predicated region fallthrough
CT: control target
= control target key end

     0   :  { %s723_s30 = smov 0   ;;  %s892_s0 = inlined_call_operand.vmem [shape: f32[64,256], index: 0, kind: input, shape index: {}]   ;;  %s893_s1 = inlined_call_operand.vmem [shape: f32[64,16], index: 1, kind: input, shape index: {}]   ;;  %s894_s2 = inlined_call_operand.vmem [shape: f32[256,32], index: 2, kind: input, shape index: {}]   ;;  %s895_s3 = inlined_call_operand.vmem [shape: f32[16,32], index: 3, kind: input, shape index: {}]   ;;  %s896_s4 = inlined_call_operand.vmem [shape: f32[1,32], index: 4, kind: input, shape index: {}]   ;;  %s897_s5 = inlined_call_operand.vmem [shape: f32[32,32], index: 5, kind: input, shape index: {}]   ;;  %s898_s6 = inlined_call_operand.vmem [shape: f32[1,32], index: 6, kind: input, shape index: {}]   ;;  %s899_s7 = inlined_call_operand.vmem [shape: f32[32,8], index: 7, kind: input, shape index: {}]   ;;  %s900_s8 = inlined_call_operand.vmem [shape: f32[1,8], index: 8, kind: input, shape index: {}]   ;;  %s901_s9 = inlined_call_operand.vmem [shape: f32[64,8], index: 9, kind: output, shape index: {}]  }
   0x1 LB: > { %s633_s10 = sadd.s32 4294967295, %s671_s30   ;;  %p637_p0 = scmp.ge.s32.totalorder %s671_s30, 1  ;;  %s671_s30 = sphi %s723_s30, %s19_s30  }
   0x2   : > { %p300_p1 = scmp.lt.s32.totalorder %s671_s30, 5 }
   0x4   : > { %p301_p2 = pnand %p637_p0, %p300_p1 }
   0x5   : > { %s638_s17 = sshll.u32 (!%p301_p2), %s633_s10, 1 }
   0x6   : > { %304 = sbr.rel (%p301_p2) target bundleno = 454 (0x1c6), region = 56  ;;  %p343_p3 = scmp.lt.s32.totalorder (!%p301_p2), %s638_s17, 7 }
   0xb   : > { %v398_v0 = vld [vmem:[%s894_s2 + $0xf8] sm:$0xff]  ;;  %v397_v1 = vld [vmem:[%s894_s2 + $0xf0] sm:$0xff]  ;;  %v396_v4 = vld [vmem:[%s894_s2 + $0xe8] sm:$0xff]  ;;  %s903_s17 = smov (!%p343_p3, %s638_s17), 7  ;;  %vm401_vm0 = vcmask 130048   ;;  %vm493_vm1 = vcmask 261120  }
   0xc   : > { %v382_v2 = vld [vmem:[%s894_s2 + $0x78] sm:$0xff]  ;;  %454 = vmatpush.msra.mxu2 %v398_v0  ;;  %v381_v3 = vld [vmem:[%s894_s2 + $0x70] sm:$0xff]  ;;  %v380_v5 = vld [vmem:[%s894_s2 + $0x68] sm:$0xff]  ;;  %s642_s12 = sshll.u32 %s903_s17, 3  ;;  %s653_s18 = sshll.u32 %s903_s17, 4  ;;  %vm562_vm2 = vcmask 64512  }
   0xd   : > { %431 = vmatpush.msra.mxu1 %v382_v2  ;;  %v395_v6 = vld [vmem:[%s894_s2 + $0xe0] sm:$0xff]  ;;  %v394_v8 = vld [vmem:[%s894_s2 + $0xd8] sm:$0xff]  ;;  %v393_v10 = vld [vmem:[%s894_s2 + $0xd0] sm:$0xff]  ;;  %s353_s26 = scalar_lea.vmem %s893_s1, %s642_s12  ;;  %s347_s27 = scalar_lea.vmem %s892_s0, %s653_s18 }
   0xe   : > { %455 = vmatpush.msra.mxu2 %v397_v1  ;;  %v379_v7 = vld [vmem:[%s894_s2 + $0x60] sm:$0xff]  ;;  %v378_v9 = vld [vmem:[%s894_s2 + $0x58] sm:$0xff]  ;;  %v377_v11 = vld [vmem:[%s894_s2 + $0x50] sm:$0xff]  ;;  %s359_s22 = scalar_lea.vmem %s901_s9, %s642_s12 }
   0xf   : > { %432 = vmatpush.msra.mxu1 %v381_v3  ;;  %v392_v12 = vld [vmem:[%s894_s2 + $0xc8] sm:$0xff]  ;;  %v399_v15 = vld [vmem:[%s895_s3] sm:$0xff]  ;;  %v390_v19 = vld [vmem:[%s894_s2 + $0xb8] sm:$0xff] }
  0x10   : > { %456 = vmatpush.msra.mxu2 %v396_v4  ;;  %v376_v13 = vld [vmem:[%s894_s2 + $0x48] sm:$0xff]  ;;  %v391_v16 = vld [vmem:[%s894_s2 + $0xc0] sm:$0xff]  ;;  %v374_v20 = vld [vmem:[%s894_s2 + $0x38] sm:$0xff] }
  0x11   : > { %433 = vmatpush.msra.mxu1 %v380_v5  ;;  %v400_v14 = vld [vmem:[%s895_s3 + $0x8] sm:$0xff]  ;;  %v375_v17 = vld [vmem:[%s894_s2 + $0x40] sm:$0xff]  ;;  %v389_v21 = vld [vmem:[%s894_s2 + $0xb0] sm:$0xff] }
  0x12   : > { %457 = vmatpush.msra.mxu2 %v395_v6  ;;  %422 = vmatpush.msra.mxu0 %v400_v14  ;;  %v365_v18 = vld [vmem:[%s353_s26] sm:$0xff]  ;;  %v373_v22 = vld [vmem:[%s894_s2 + $0x30] sm:$0xff]  ;;  %v388_v23 = vld [vmem:[%s894_s2 + $0xa8] sm:$0xff] }
  0x13   : > { %434 = vmatpush.msra.mxu1 %v379_v7  ;;  %v372_v24 = vld [vmem:[%s894_s2 + $0x28] sm:$0xff]  ;;  %v387_v25 = vld [vmem:[%s894_s2 + $0xa0] sm:$0xff]  ;;  %v386_v28 = vld [vmem:[%s894_s2 + $0x98] sm:$0xff] }
  0x14   : > { %458 = vmatpush.msra.mxu2 %v394_v8  ;;  %423 = vmatpush.msra.mxu0 %v399_v15  ;;  %v371_v26 = vld [vmem:[%s894_s2 + $0x20] sm:$0xff]  ;;  %v366_v27 = vld [vmem:[%s353_s26 + $0x8] sm:$0xff]  ;;  %v370_v29 = vld [vmem:[%s894_s2 + $0x18] sm:$0xff] }
  0x15   : > { %435 = vmatpush.msra.mxu1 %v378_v9  ;;  %645 = vmatmul.msk.f32.vlgmr.msra.gmra.mxu0 %vm401_vm0, %v365_v18  ;;  %v385_v30 = vld [vmem:[%s894_s2 + $0x90] sm:$0xff]  ;;  %v384_v32 = vld [vmem:[%s894_s2 + $0x88] sm:$0xff]  ;;  %v383_v34 = vld [vmem:[%s894_s2 + $0x80] sm:$0xff] }
  0x16   : > { %459 = vmatpush.msra.mxu2 %v393_v10  ;;  %v369_v31 = vld [vmem:[%s894_s2 + $0x10] sm:$0xff]  ;;  %v368_v33 = vld [vmem:[%s894_s2 + $0x8] sm:$0xff]  ;;  %v367_v35 = vld [vmem:[%s894_s2] sm:$0xff] }
  0x17   : > { %436 = vmatpush.msra.mxu1 %v377_v11  ;;  %v362_v36 = vld [vmem:[%s347_s27 + $0x8] sm:$0xff]  ;;  %v361_v37 = vld [vmem:[%s347_s27] sm:$0xff]  ;;  %v364_v38 = vld [vmem:[%s347_s27 + $0x18] sm:$0xff] }
  0x18   : > { %460 = vmatpush.msra.mxu2 %v392_v12  ;;  %v363_v39 = vld [vmem:[%s347_s27 + $0x10] sm:$0xff]  ;;  %v488_v40 = vld [vmem:[%s897_s5 + $0x18] sm:$0xff]  ;;  %v486_v42 = vld [vmem:[%s897_s5 + $0x8] sm:$0xff] }
  0x19   : > { %437 = vmatpush.msra.mxu1 %v376_v13  ;;  %512 = vmatpush.msra.mxu3 %v488_v40  ;;  %v487_v41 = vld [vmem:[%s897_s5 + $0x10] sm:$0xff]  ;;  %v485_v43 = vld [vmem:[%s897_s5] sm:$0xff]  ;;  %v528_v44 = vld [vmem:[%s899_s7 + $0x18] sm:$0xff] }
  0x1a   : > { %461 = vmatpush.msra.mxu2 %v391_v16  ;;  %v527_v45 = vld [vmem:[%s899_s7 + $0x10] sm:$0xff]  ;;  %551 = vmatpush.msrb.mxu0 %v528_v44  ;;  %v526_v46 = vld [vmem:[%s899_s7 + $0x8] sm:$0xff]  ;;  %v662_v50 = vld [vmem:[%s896_s4] ss:$0 sm:$0xff] }
  0x1b   : > { %438 = vmatpush.msra.mxu1 %v375_v17  ;;  %513 = vmatpush.msra.mxu3 %v487_v41  ;;  %v525_v62 = vld [vmem:[%s899_s7] sm:$0xff] }
  0x1c   : > { %462 = vmatpush.msra.mxu2 %v390_v19  ;;  %552 = vmatpush.msrb.mxu0 %v527_v45  ;;  %v663_v63 = vld [vmem:[%s898_s6] ss:$0 sm:$0xff] }
  0x1d   : > { %439 = vmatpush.msra.mxu1 %v374_v20  ;;  %646 = vmatmul.msk.f32.gmra.mxu0 %vm401_vm0, %v366_v27  ;;  %v664_v6 = vld [vmem:[%s900_s8] ss:$0 sm:$0xff] }
  0x1e   : > { %463 = vmatpush.msra.mxu2 %v389_v21  ;;  %514 = vmatpush.msra.mxu3 %v486_v42 }
  0x1f   : > { %440 = vmatpush.msra.mxu1 %v373_v22  ;;  %553 = vmatpush.msrb.mxu0 %v526_v46 }
  0x20   : > { %464 = vmatpush.msra.mxu2 %v388_v23  ;;  %515 = vmatpush.msra.mxu3 %v485_v43 }
  0x21   : > { %441 = vmatpush.msra.mxu1 %v372_v24  ;;  %554 = vmatpush.msrb.mxu0 %v525_v62 }
  0x22   : > { %465 = vmatpush.msra.mxu2 %v387_v25 }
  0x23   : > { %442 = vmatpush.msra.mxu1 %v371_v26 }
  0x24   : > { %466 = vmatpush.msra.mxu2 %v386_v28 }
  0x25   : > { %443 = vmatpush.msra.mxu1 %v370_v29 }
  0x26   : > { %467 = vmatpush.msra.mxu2 %v385_v30 }
  0x27   : > { %444 = vmatpush.msra.mxu1 %v369_v31 }
  0x28   : > { %468 = vmatpush.msra.mxu2 %v384_v32 }
  0x29   : > { %445 = vmatpush.msra.mxu1 %v368_v33 }
  0x2a   : > { %469 = vmatpush.msra.mxu2 %v383_v34 }
  0x2b   : > { %446 = vmatpush.msra.mxu1 %v367_v35  ;;  %470 = vmatmul.f32.vlgmr.msra.gmra.mxu2 %v362_v36 }
  0x2c   : > { %447 = vmatmul.f32.vlgmr.msra.gmra.mxu1 %v361_v37 }
  0x33   : > { %473 = vmatmul.f32.gmra.mxu2 %v364_v38 }
  0x34   : > { %450 = vmatmul.f32.gmra.mxu1 %v363_v39 }
  0x92   : > { %v425_v47 = vpop.f32.mrf.mxu0 }
  0x9a   : > { %v428_v53 = vpop.f32.mrf.mxu0 }
  0xa9   : > { %v448_v48 = vpop.f32.mrf.mxu1 }
  0xaa   : > { %v449_v49 = vadd.f32 %v448_v48, %v425_v47 }
  0xae   : > { %v471_v51 = vpop.f32.mrf.mxu2 }
  0xaf   : > { %v472_v52 = vadd.f32 %v471_v51, %v449_v49 }
  0xb1   : > { %v451_v54 = vpop.f32.mrf.mxu1  ;;  %v481_v55 = vadd.f32 %v662_v50, %v472_v52 }
  0xb2   : > { %v452_v57 = vadd.f32 %v451_v54, %v428_v53 }
  0xb3   : > { %v483_v56 = vmax.f32 %v481_v55, 0.0 }
  0xb5   : > { %647 = vmatmul.msk.f32.vlgmr.msra.gmra.mxu3 %vm493_vm1, %v483_v56 }
  0xb6   : > { %v474_v58 = vpop.f32.mrf.mxu2 }
  0xb7   : > { %v475_v59 = vadd.f32 %v474_v58, %v452_v57 }
  0xb9   : > { %v482_v60 = vadd.f32 %v662_v50, %v475_v59 }
  0xbb   : > { %v484_v61 = vmax.f32 %v482_v60, 0.0 }
  0xbd   : > { %648 = vmatmul.msk.f32.gmra.mxu3 %vm493_vm1, %v484_v61 }
 0x138   : > { %v517_v0 = vpop.f32.mrf.mxu3 }
 0x139   : > { %v518_v1 = vadd.f32 %v663_v63, %v517_v0 }
 0x13b   : > { %v523_v2 = vmax.f32 %v518_v1, 0.0 }
 0x13d   : > { %649 = vmatmul.msk.f32.vlgmr.msrb.gmra.mxu0 %vm493_vm1, %v523_v2 }
 0x140   : > { %v520_v3 = vpop.f32.mrf.mxu3 }
 0x141   : > { %v521_v4 = vadd.f32 %v663_v63, %v520_v3 }
 0x143   : > { %v524_v5 = vmax.f32 %v521_v4, 0.0 }
 0x145   : > { %650 = vmatmul.msk.f32.gmra.mxu0 %vm493_vm1, %v524_v5 }
 0x1ba   : > { %v556_v7 = vpop.f32.mrf.mxu0 }
 0x1bb   : > { %v557_v8 = vadd.f32 %v664_v6, %v556_v7 }
 0x1bd   : > { %563 = vst.msk [vmem:[%s359_s22] sm:$0xff] %vm562_vm2, %v557_v8 }
 0x1c2   : > { %v559_v9 = vpop.f32.mrf.mxu0 }
 0x1c3   : > { %v560_v10 = vadd.f32 %v664_v6, %v559_v9 }
 0x1c5   : > { %564 = vst.msk [vmem:[%s359_s22 + $0x8] sm:$0xff] %vm562_vm2, %v560_v10 }
 0x1c6 PF: > { %s19_s30 = sadd.s32 1, %s671_s30  }
 0x1c7   : > { %p16_p4 = scmp.ge.s32.totalorder %s19_s30, 6  }
 0x1c9   :  { %18 = sbr.rel (!%p16_p4) target bundleno = 1 (0x1), region = 89 }

</bundles_post_ra>
